<compile_context>
chip_gen: v7x
topology: tpu7x:2x2x1
jax: 0.10.0
libtpu: 0.0.40
codegen_flags: <defaults>
</compile_context>

<pallas_src>
import jax
import jax.numpy as jnp
from jax.experimental import pallas as pl
from jax.experimental.pallas import tpu as pltpu

HIDDEN = 128
SUBLANE_PAD = 16  # works for f32 (8) and bf16 (16) batch-tile granularity


def _round_up(x, m):
    return ((x + m - 1) // m) * m


def planner_kernel(x_ref, w1_ref, b1_ref, w2_ref, b2_ref, o_ref):
    # x_ref:  (TB, latent_dim)          VMEM, one batch tile per grid step
    # w1_ref: (latent_dim, HIDDEN)      VMEM, resident across steps
    # b1_ref: (1, HIDDEN)               VMEM, resident
    # w2_ref: (HIDDEN, action_dim)      VMEM, resident
    # b2_ref: (1, action_dim)           VMEM, resident
    # o_ref:  (TB, action_dim)          VMEM output tile (last dim == full dim)
    x = x_ref[...]
    w1 = w1_ref[...]
    w2 = w2_ref[...]

    # Cast x to the weight dtype *inside* the kernel (no extra wrapper HBM pass).
    h = jnp.dot(x.astype(w1.dtype), w1, preferred_element_type=jnp.float32)
    h = h + b1_ref[...]
    h = jnp.maximum(h, 0.0)  # f32 elementwise (VPU), v5e-safe

    y = jnp.dot(h.astype(w2.dtype), w2, preferred_element_type=jnp.float32)
    y = y + b2_ref[...]
    o_ref[...] = jnp.tanh(y).astype(o_ref.dtype)


def planner_forward(latent, w1, b1, w2, b2, *, block_batch=4096,
                    out_dtype=jnp.float32, min_pallas_batch=64):
    """Planner forward pass: tanh(relu(latent @ w1 + b1) @ w2 + b2).

    latent: [B, latent_dim]
    w1: [latent_dim, HIDDEN], b1: [HIDDEN] or [1, HIDDEN]
    w2: [HIDDEN, action_dim], b2: [action_dim] or [1, action_dim]
    Returns: [B, action_dim] in out_dtype.
    """
    B, latent_dim = latent.shape
    hidden = w1.shape[1]
    action_dim = w2.shape[1]
    b1c = jnp.reshape(b1, (1, hidden))
    b2c = jnp.reshape(b2, (1, action_dim))

    # Tiny-batch fast path: pallas launch/pipeline overhead would dominate.
    if B < min_pallas_batch:
        h = jnp.maximum(
            jnp.dot(latent.astype(w1.dtype), w1,
                    preferred_element_type=jnp.float32) + b1c, 0.0)
        y = jnp.dot(h.astype(w2.dtype), w2,
                    preferred_element_type=jnp.float32) + b2c
        return jnp.tanh(y).astype(out_dtype)

    # Batch tile: big enough to amortize per-step overhead, capped at ceil(B/2)
    # so the grid always has >=2 steps (keeps both v7x TensorCores busy),
    # rounded to a sublane-friendly multiple. B is NOT padded: Pallas handles
    # the partial last block (OOB tail writes are discarded).
    tb = _round_up(min(block_batch, pl.cdiv(B, 2)), SUBLANE_PAD)
    grid = (pl.cdiv(B, tb),)

    return pl.pallas_call(
        planner_kernel,
        out_shape=jax.ShapeDtypeStruct((B, action_dim), out_dtype),
        grid=grid,
        in_specs=[
            # x: one batch tile per grid step (double-buffered pipeline).
            pl.BlockSpec((tb, latent_dim), lambda i: (i, 0)),
            # Weights & biases: same block every step -> VMEM-resident.
            pl.BlockSpec((latent_dim, hidden), lambda i: (0, 0)),
            pl.BlockSpec((1, hidden), lambda i: (0, 0)),
            pl.BlockSpec((hidden, action_dim), lambda i: (0, 0)),
            pl.BlockSpec((1, action_dim), lambda i: (0, 0)),
        ],
        out_specs=pl.BlockSpec((tb, action_dim), lambda i: (i, 0)),
        compiler_params=pltpu.CompilerParams(
            dimension_semantics=("parallel",),  # megacore sharding on v7x
        ),
    )(latent, w1, b1c, w2, b2c)


def cast_planner_weights_bf16(w1, b1, w2, b2):
    """One-time weight cast for the bf16 matmul path (biases stay f32)."""
    return (w1.astype(jnp.bfloat16), b1.astype(jnp.float32),
            w2.astype(jnp.bfloat16), b2.astype(jnp.float32))


def init_planner_params(key, latent_dim, action_dim):
    """Deterministic init matching nn.Linear shapes (weights stored as [in, out])."""
    k1, k2, k3, k4 = jax.random.split(key, 4)
    lim1 = 1.0 / jnp.sqrt(latent_dim)
    lim2 = 1.0 / jnp.sqrt(HIDDEN)
    w1 = jax.random.uniform(k1, (latent_dim, HIDDEN), jnp.float32, -lim1, lim1)
    b1 = jax.random.uniform(k2, (1, HIDDEN), jnp.float32, -lim1, lim1)
    w2 = jax.random.uniform(k3, (HIDDEN, action_dim), jnp.float32, -lim2, lim2)
    b2 = jax.random.uniform(k4, (1, action_dim), jnp.float32, -lim2, lim2)
    return w1, b1, w2, b2


def _reference(latent, w1, b1, w2, b2):
    return jnp.tanh(jnp.maximum(latent @ w1 + b1.reshape(1, -1), 0.0) @ w2
                    + b2.reshape(1, -1))


if __name__ == "__main__":
    latent_dim = 32
    action_dim = 8

    key = jax.random.PRNGKey(0)
    k_params, k_x1, k_x2, k_x3 = jax.random.split(key, 4)
    w1, b1, w2, b2 = init_planner_params(k_params, latent_dim, action_dim)

    # --- tiny batch (agent-step path): bypasses the Pallas kernel. ---
    latent_small = jax.random.normal(k_x1, (8, latent_dim), jnp.float32)
    out_small = jax.block_until_ready(planner_forward(latent_small, w1, b1, w2, b2))
    ref_small = _reference(latent_small, w1, b1, w2, b2)
    assert out_small.shape == (8, action_dim)
    assert jnp.allclose(out_small, ref_small, atol=1e-5, rtol=1e-5)

    # --- mid batch: exercises the >=2-step grid and partial last block. ---
    latent_mid = jax.random.normal(k_x3, (100, latent_dim), jnp.float32)
    out_mid = jax.block_until_ready(planner_forward(latent_mid, w1, b1, w2, b2))
    ref_mid = _reference(latent_mid, w1, b1, w2, b2)
    assert out_mid.shape == (100, action_dim)
    assert jnp.allclose(out_mid, ref_mid, atol=1e-5, rtol=1e-5)

    # --- larger batch: resident weights, 2 batch tiles, no wrapper padding
    #     (1000 rows, tile = 504 rows -> tail handled by Pallas). ---
    latent_big = jax.random.normal(k_x2, (1000, latent_dim), jnp.float32)
    out_big = jax.block_until_ready(planner_forward(latent_big, w1, b1, w2, b2))
    ref_big = _reference(latent_big, w1, b1, w2, b2)
    assert out_big.shape == (1000, action_dim)
    assert jnp.allclose(out_big, ref_big, atol=1e-5, rtol=1e-5)

    # --- bf16 weights (pre-cast once) + bf16 output writeback (fast path). ---
    w1b, b1b, w2b, b2b = cast_planner_weights_bf16(w1, b1, w2, b2)
    out_bf16 = jax.block_until_ready(
        planner_forward(latent_big, w1b, b1b, w2b, b2b, out_dtype=jnp.bfloat16))
    assert out_bf16.dtype == jnp.bfloat16
    assert jnp.allclose(out_bf16.astype(jnp.float32), ref_big,
                        atol=5e-2, rtol=5e-2)

    print("KERNEL_OK")
</pallas_src>

<mosaic_0001>
module attributes {stable_mosaic.version = 11 : i64} {
  func.func @planner_kernel(%arg0: i32, %arg1: memref<64x32xf32, #tpu.memory_space<vmem>>, %arg2: memref<32x128xf32, #tpu.memory_space<vmem>>, %arg3: memref<1x128xf32, #tpu.memory_space<vmem>>, %arg4: memref<128x8xf32, #tpu.memory_space<vmem>>, %arg5: memref<1x8xf32, #tpu.memory_space<vmem>>, %arg6: memref<64x8xf32, #tpu.memory_space<vmem>>) attributes {dimension_semantics = [#tpu.dimension_semantics<parallel>], iteration_bounds = array<i64: 2>, scalar_prefetch = 0 : i64, scratch_operands = 0 : i64, tpu.core_type = #tpu.core_type<tc>, window_params = [{transform_indices = @transform_0, window_bounds = array<i64: 64, 32>}, {pipeline_mode = #tpu.pipeline_mode<synchronous>, transform_indices = @transform_1, window_bounds = array<i64: 32, 128>}, {pipeline_mode = #tpu.pipeline_mode<synchronous>, transform_indices = @transform_2, window_bounds = array<i64: 1, 128>}, {pipeline_mode = #tpu.pipeline_mode<synchronous>, transform_indices = @transform_3, window_bounds = array<i64: 128, 8>}, {pipeline_mode = #tpu.pipeline_mode<synchronous>, transform_indices = @transform_4, window_bounds = array<i64: 1, 8>}, {transform_indices = @transform_5, window_bounds = array<i64: 64, 8>}]} {
    %c0 = arith.constant 0 : index
    %c0_0 = arith.constant 0 : index
    %0 = vector.load %arg1[%c0, %c0_0] : memref<64x32xf32, #tpu.memory_space<vmem>>, vector<64x32xf32>
    %c0_1 = arith.constant 0 : index
    %c0_2 = arith.constant 0 : index
    %1 = vector.load %arg2[%c0_1, %c0_2] : memref<32x128xf32, #tpu.memory_space<vmem>>, vector<32x128xf32>
    %c0_3 = arith.constant 0 : index
    %c0_4 = arith.constant 0 : index
    %2 = vector.load %arg4[%c0_3, %c0_4] : memref<128x8xf32, #tpu.memory_space<vmem>>, vector<128x8xf32>
    %cst = arith.constant dense<0.000000e+00> : vector<64x128xf32>
    %3 = tpu.matmul %0, %1, %cst {dimension_numbers = #tpu.dot_dimension_numbers<[1], [0], [0], [1], [0, 0, 1, 1], [], []>} : vector<64x32xf32>, vector<32x128xf32>, vector<64x128xf32> -> vector<64x128xf32>
    %c0_5 = arith.constant 0 : index
    %c0_6 = arith.constant 0 : index
    %4 = vector.load %arg3[%c0_5, %c0_6] : memref<1x128xf32, #tpu.memory_space<vmem>>, vector<1x128xf32>
    %5 = vector.broadcast %4 : vector<1x128xf32> to vector<64x128xf32>
    %6 = arith.addf %3, %5 : vector<64x128xf32>
    %cst_7 = arith.constant 0.000000e+00 : f32
    %7 = vector.broadcast %cst_7 : f32 to vector<64x128xf32>
    %8 = arith.maximumf %6, %7 : vector<64x128xf32>
    %cst_8 = arith.constant dense<0.000000e+00> : vector<64x8xf32>
    %9 = tpu.matmul %8, %2, %cst_8 {dimension_numbers = #tpu.dot_dimension_numbers<[1], [0], [0], [1], [0, 0, 1, 1], [], []>} : vector<64x128xf32>, vector<128x8xf32>, vector<64x8xf32> -> vector<64x8xf32>
    %c0_9 = arith.constant 0 : index
    %c0_10 = arith.constant 0 : index
    %10 = vector.load %arg5[%c0_9, %c0_10] : memref<1x8xf32, #tpu.memory_space<vmem>>, vector<1x8xf32>
    %11 = vector.broadcast %10 : vector<1x8xf32> to vector<64x8xf32>
    %12 = arith.addf %9, %11 : vector<64x8xf32>
    %13 = math.tanh %12 : vector<64x8xf32>
    %c0_11 = arith.constant 0 : index
    %c0_12 = arith.constant 0 : index
    %14 = vector.load %arg6[%c0_11, %c0_12] : memref<64x8xf32, #tpu.memory_space<vmem>>, vector<64x8xf32>
    tpu.vector_store %arg6[%c0_11, %c0_12], %13 {strides = array<i32>} : memref<64x8xf32, #tpu.memory_space<vmem>>, vector<64x8xf32>,
    return
  }
  func.func @transform_0(%arg0: i32) -> (i32, i32) {
    %c0_i32 = arith.constant 0 : i32
    %c0_i32_0 = arith.constant 0 : i32
    return %arg0, %c0_i32 : i32, i32
  }
  func.func @transform_1(%arg0: i32) -> (i32, i32) {
    %c0_i32 = arith.constant 0 : i32
    %c0_i32_0 = arith.constant 0 : i32
    %c0_i32_1 = arith.constant 0 : i32
    return %c0_i32, %c0_i32_0 : i32, i32
  }
  func.func @transform_2(%arg0: i32) -> (i32, i32) {
    %c0_i32 = arith.constant 0 : i32
    %c0_i32_0 = arith.constant 0 : i32
    %c0_i32_1 = arith.constant 0 : i32
    return %c0_i32, %c0_i32_0 : i32, i32
  }
  func.func @transform_3(%arg0: i32) -> (i32, i32) {
    %c0_i32 = arith.constant 0 : i32
    %c0_i32_0 = arith.constant 0 : i32
    %c0_i32_1 = arith.constant 0 : i32
    return %c0_i32, %c0_i32_0 : i32, i32
  }
  func.func @transform_4(%arg0: i32) -> (i32, i32) {
    %c0_i32 = arith.constant 0 : i32
    %c0_i32_0 = arith.constant 0 : i32
    %c0_i32_1 = arith.constant 0 : i32
    return %c0_i32, %c0_i32_0 : i32, i32
  }
  func.func @transform_5(%arg0: i32) -> (i32, i32) {
    %c0_i32 = arith.constant 0 : i32
    %c0_i32_0 = arith.constant 0 : i32
    return %arg0, %c0_i32 : i32, i32
  }
}

</mosaic_0001>

<bundles_post_ra>
// kernel: tpu_custom_call.1
= control target key start
LH: loop header
LB: loop body
LE: loop exit
PB: predicated region body
PF: predicated region fallthrough
CT: control target
= control target key end

     0   :  { %s1206_s18 = smov 0   ;;  %s1208_s19 = smov 0   ;;  %s1407_s0 = inlined_call_operand.vmem [shape: f32[100,32], index: 0, kind: input, shape index: {}]   ;;  %s1408_s1 = inlined_call_operand.vmem [shape: f32[32,128], index: 1, kind: input, shape index: {}]   ;;  %s1409_s2 = inlined_call_operand.vmem [shape: f32[1,128], index: 2, kind: input, shape index: {}]   ;;  %s1410_s3 = inlined_call_operand.vmem [shape: f32[128,8], index: 3, kind: input, shape index: {}]   ;;  %s1411_s4 = inlined_call_operand.vmem [shape: f32[1,8], index: 4, kind: input, shape index: {}]   ;;  %s1412_s5 = inlined_call_operand.vmem [shape: f32[100,8], index: 5, kind: output, shape index: {}]  }
   0x1   :  { %s1210_s20 = smov 0  }
   0x2 LB: > { %s1219_s21 = sadd.s32 4294967295, %s1142_s20   ;;  %s1221_s22 = sadd.s32 1, %s1142_s20   ;;  %s1142_s20 = sphi %s1210_s20, %s1419_s20   ;;  %s1138_s19 = sphi %s1208_s19, %s1418_s19   ;;  %s1134_s18 = sphi %s1206_s18, %s1417_s18  }
   0x3   : > { %s129_s23 = ssub.s32 %s1142_s20, %s1221_s22  ;;  %s132_s24 = sadd.s32 1, %s1138_s19 }
   0x4   : > { %p130_p0 = scmp.eq.s32.totalorder %s129_s23, 0  ;;  %p142_p1 = scmp.ne.s32.totalorder %s1138_s19, %s1134_s18 }
   0x5   : > { %p143_p2 = scmp.eq.s32.totalorder %s1219_s21, 1  ;;  %p794_p3 = scmp.ge.s32.totalorder %s1142_s20, 1 }
   0x6   : > { %s1229_s25 = scalar_select %p130_p0, %s1138_s19, %s132_s24  }
   0x7   : > { %p1231_p4 = por %p143_p2, %p142_p1  ;;  %p196_p5 = scmp.lt.s32.totalorder %s1142_s20, 3 }
   0x9   : > { %p197_p6 = pnand %p794_p3, %p196_p5 }
   0xa   : > { %v254_v0 = vld [vmem:[%s1408_s1] sm:$0xff] (!%p197_p6)  ;;  %v255_v1 = vld [vmem:[%s1408_s1 + $0x8] sm:$0xff] (!%p197_p6)  ;;  %v256_v2 = vld [vmem:[%s1408_s1 + $0x10] sm:$0xff] (!%p197_p6)  ;;  %s1245_s8 = sshll.u32 (!%p197_p6), %s1219_s21, 3  ;;  %vm281_vm0 = vcmask (!%p197_p6), 261120   ;;  %s224_s16 = sand.u32 (!%p197_p6), 1, %s1134_s18  }
   0xb   : > { %200 = sbr.rel (%p197_p6) target bundleno = 530 (0x212), region = 40  ;;  %v928_v3 = vpack.c.bf16 (!%p197_p6), %v255_v1, %v254_v0  ;;  %v257_v4 = vld [vmem:[%s1408_s1 + $0x18] sm:$0xff] (!%p197_p6)  ;;  %p232_p7 = scmp.lt.s32.totalorder (!%p197_p6), %s1245_s8, 12  ;;  %v258_v5 = vld [vmem:[%s1410_s3] sm:$0xff] (!%p197_p6)  ;;  %v259_v6 = vld [vmem:[%s1410_s3 + $0x8] sm:$0xff] (!%p197_p6)  ;;  %vm539_vm1 = vcmask (!%p197_p6), 64512  }
   0xc   : > { %v932_v7 = vpack.c.bf16 (!%p197_p6), %v257_v4, %v256_v2  ;;  %v936_v8 = vpack.c.bf16 (!%p197_p6), %v259_v6, %v258_v5  ;;  %v260_v9 = vld [vmem:[%s1410_s3 + $0x10] sm:$0xff] (!%p197_p6)  ;;  %v261_v10 = vld [vmem:[%s1410_s3 + $0x18] sm:$0xff] (!%p197_p6)  ;;  %v262_v12 = vld [vmem:[%s1410_s3 + $0x20] sm:$0xff] (!%p197_p6)  ;;  %s795_s17 = sshll.u32 (!%p197_p6), %s224_s16, 6 }
   0xd   : > { %929 = vmatprep.subr.bf16.mxu0 (!%p197_p6), %v928_v3  ;;  %v940_v11 = vpack.c.bf16 (!%p197_p6), %v261_v10, %v260_v9  ;;  %v263_v13 = vld [vmem:[%s1410_s3 + $0x28] sm:$0xff] (!%p197_p6)  ;;  %v264_v18 = vld [vmem:[%s1410_s3 + $0x30] sm:$0xff] (!%p197_p6)  ;;  %v265_v19 = vld [vmem:[%s1410_s3 + $0x38] sm:$0xff] (!%p197_p6)  ;;  %s1328_s20 = scalar_lea.vmem (!%p197_p6), [#allocation2], %s795_s17  }
   0xe   : > { %931 = vmatpush3.bf16.msra.mxu0 (!%p197_p6), %v928_v3  ;;  %968 = vmatprep.subr.bf16.mxu1 (!%p197_p6), %v936_v8  ;;  %v944_v16 = vpack.c.bf16 (!%p197_p6), %v263_v13, %v262_v12  ;;  %v948_v21 = vpack.c.bf16 (!%p197_p6), %v265_v19, %v264_v18  ;;  %v266_v23 = vld [vmem:[%s1410_s3 + $0x40] sm:$0xff] (!%p197_p6)  ;;  %v267_v24 = vld [vmem:[%s1410_s3 + $0x48] sm:$0xff] (!%p197_p6)  ;;  %v268_v28 = vld [vmem:[%s1410_s3 + $0x50] sm:$0xff] (!%p197_p6) }
   0xf   : > { %933 = vmatprep.subr.bf16.mxu0 (!%p197_p6), %v932_v7  ;;  %976 = vmatpush3.bf16.msra.mxu1 (!%p197_p6), %v936_v8  ;;  %v952_v26 = vpack.c.bf16 (!%p197_p6), %v267_v24, %v266_v23  ;;  %v269_v29 = vld [vmem:[%s1410_s3 + $0x58] sm:$0xff] (!%p197_p6)  ;;  %v270_v32 = vld [vmem:[%s1410_s3 + $0x60] sm:$0xff] (!%p197_p6)  ;;  %v271_v33 = vld [vmem:[%s1410_s3 + $0x68] sm:$0xff] (!%p197_p6) }
  0x10   : > { %969 = vmatprep.subr.bf16.mxu1 (!%p197_p6), %v940_v11  ;;  %v956_v31 = vpack.c.bf16 (!%p197_p6), %v269_v29, %v268_v28  ;;  %v960_v34 = vpack.c.bf16 (!%p197_p6), %v271_v33, %v270_v32  ;;  %v272_v35 = vld [vmem:[%s1410_s3 + $0x70] sm:$0xff] (!%p197_p6)  ;;  %v273_v36 = vld [vmem:[%s1410_s3 + $0x78] sm:$0xff] (!%p197_p6)  ;;  %v798_v38 = vld [vmem:[%s1409_s2] ss:$0 sm:$0xff] (!%p197_p6) }
  0x11   : > { %v964_v37 = vpack.c.bf16 (!%p197_p6), %v273_v36, %v272_v35  ;;  %v807_v63 = vld [vmem:[%s1411_s4] ss:$0 sm:$0xff] (!%p197_p6) }
  0x12   : > { %s233_s23 = scalar_select %p232_p7, %s1245_s8, 12  ;;  %935 = vmatpush3.bf16.msra.mxu0 %v932_v7 }
  0x13   : > { %937 = vmatprep.subr.bf16.mxu0 %v936_v8  ;;  %977 = vmatpush3.bf16.msra.mxu1 %v940_v11  ;;  %s556_s18 = ssub.s32 (%p1231_p4), 13, %s1245_s8 }
  0x14   : > { %s797_s24 = sshll.u32 %s233_s23, 3  ;;  %970 = vmatprep.subr.bf16.mxu1 %v944_v16  ;;  %s825_s23 = sshll.u32 (%p1231_p4), %s1219_s21, 6 }
  0x15   : > { %s1273_s9 = scalar_lea.vmem %s1407_s0, %s797_s24  ;;  %p557_p8 = scmp.lt.s32.totalorder (%p1231_p4), %s556_s18, 8 }
  0x16   : > { %v246_v14 = vld [vmem:[%s1273_s9] sm:$0xff]  ;;  %v247_v15 = vld [vmem:[%s1273_s9 + $0x8] sm:$0xff]  ;;  %v248_v17 = vld [vmem:[%s1273_s9 + $0x10] sm:$0xff]  ;;  %s1353_s28 = scalar_lea.vmem (%p1231_p4), %s1412_s5, %s825_s23  }
  0x17   : > { %872 = vmatprep.mubr.msk.f32.mxu0 %vm281_vm0, %v246_v14  ;;  %v249_v20 = vld [vmem:[%s1273_s9 + $0x18] sm:$0xff]  ;;  %v250_v22 = vld [vmem:[%s1273_s9 + $0x20] sm:$0xff]  ;;  %978 = vmatpush3.bf16.msra.mxu1 %v944_v16  ;;  %v251_v25 = vld [vmem:[%s1273_s9 + $0x28] sm:$0xff] }
  0x18   : > { %873 = vmatmul.mubr.msk.f32.vlgmr.msra.gmra.mrb[0].mxu0 %vm281_vm0, %v247_v15  ;;  %971 = vmatprep.subr.bf16.mxu1 %v948_v21  ;;  %v252_v27 = vld [vmem:[%s1273_s9 + $0x30] sm:$0xff]  ;;  %v253_v30 = vld [vmem:[%s1273_s9 + $0x38] sm:$0xff] }
  0x19   : > { %875 = vmatprep.mubr.msk.f32.mxu0 %vm281_vm0, %v248_v17  ;;  %939 = vmatpush3.bf16.msra.mxu0 %v936_v8 }
  0x1a   : > { %941 = vmatprep.subr.bf16.mxu0 %v940_v11 }
  0x1b   : > { %979 = vmatpush3.bf16.msra.mxu1 %v948_v21 }
  0x1c   : > { %876 = vmatmul.mubr.msk.f32.gmra.mrb[2].mxu0 %vm281_vm0, %v249_v20  ;;  %972 = vmatprep.subr.bf16.mxu1 %v952_v26 }
  0x1d   : > { %878 = vmatprep.mubr.msk.f32.mxu0 %vm281_vm0, %v250_v22  ;;  %943 = vmatpush3.bf16.msra.mxu0 %v940_v11 }
  0x1e   : > { %945 = vmatprep.subr.bf16.mxu0 %v944_v16 }
  0x1f   : > { %980 = vmatpush3.bf16.msra.mxu1 %v952_v26 }
  0x20   : > { %879 = vmatmul.mubr.msk.f32.gmra.mrb[4].mxu0 %vm281_vm0, %v251_v25  ;;  %973 = vmatprep.subr.bf16.mxu1 %v956_v31 }
  0x21   : > { %881 = vmatprep.mubr.msk.f32.mxu0 %vm281_vm0, %v252_v27  ;;  %947 = vmatpush3.bf16.msra.mxu0 %v944_v16 }
  0x22   : > { %949 = vmatprep.subr.bf16.mxu0 %v948_v21 }
  0x23   : > { %981 = vmatpush3.bf16.msra.mxu1 %v956_v31 }
  0x24   : > { %882 = vmatmul.mubr.msk.f32.gmra.mrb[6].mxu0 %vm281_vm0, %v253_v30  ;;  %974 = vmatprep.subr.bf16.mxu1 %v960_v34 }
  0x25   : > { %951 = vmatpush3.bf16.msra.mxu0 %v948_v21 }
  0x26   : > { %953 = vmatprep.subr.bf16.mxu0 %v952_v26 }
  0x27   : > { %982 = vmatpush3.bf16.msra.mxu1 %v960_v34 }
  0x28   : > { %975 = vmatprep.subr.bf16.mxu1 %v964_v37 }
  0x29   : > { %955 = vmatpush3.bf16.msra.mxu0 %v952_v26 }
  0x2a   : > { %957 = vmatprep.subr.bf16.mxu0 %v956_v31 }
  0x2b   : > { %983 = vmatpush3.bf16.msra.mxu1 %v964_v37 }
  0x2d   : > { %959 = vmatpush3.bf16.msra.mxu0 %v956_v31 }
  0x2e   : > { %961 = vmatprep.subr.bf16.mxu0 %v960_v34 }
  0x31   : > { %963 = vmatpush3.bf16.msra.mxu0 %v960_v34 }
  0x32   : > { %965 = vmatprep.subr.bf16.mxu0 %v964_v37 }
  0x35   : > { %967 = vmatpush3.bf16.msra.mxu0 %v964_v37 }
  0xeb   : > { %v874_v39 = vpop.f32.mrb[0].mxu0 }
  0xec   : > { %v378_v40 = vadd.f32 %v874_v39, %v798_v38  ;;  %v372_v41 = vpop.f32.mrb[1].mxu0 }
  0xed   : > { %v373_v42 = vadd.f32 %v798_v38, %v372_v41 }
  0xee   : > { %v412_v45 = vmax.f32 %v378_v40, 0.0 }
  0xef   : > { %v411_v43 = vmax.f32 %v373_v42, 0.0  ;;  %v877_v44 = vpop.f32.mrb[2].mxu0 }
  0xf0   : > { %v388_v46 = vadd.f32 %v877_v44, %v798_v38  ;;  %v382_v47 = vpop.f32.mrb[3].mxu0 }
  0xf1   : > { %916 = vmatprep.mubr.f32.mxu0 %v411_v43  ;;  %v383_v48 = vadd.f32 %v798_v38, %v382_v47 }
  0xf2   : > { %917 = vmatmul.mubr.f32.vlgmr.msra.gmra.mrb[8].mxu0 %v412_v45  ;;  %v414_v51 = vmax.f32 %v388_v46, 0.0 }
  0xf3   : > { %v880_v49 = vpop.f32.mrb[4].mxu0  ;;  %v413_v50 = vmax.f32 %v383_v48, 0.0 }
  0xf4   : > { %v398_v52 = vadd.f32 %v880_v49, %v798_v38  ;;  %v392_v53 = vpop.f32.mrb[5].mxu0 }
  0xf5   : > { %v393_v54 = vadd.f32 %v798_v38, %v392_v53  ;;  %919 = vmatprep.mubr.f32.mxu1 %v413_v50 }
  0xf6   : > { %920 = vmatmul.mubr.f32.vlgmr.msra.gmra.mrb[0].mxu1 %v414_v51  ;;  %v416_v57 = vmax.f32 %v398_v52, 0.0 }
  0xf7   : > { %v415_v55 = vmax.f32 %v393_v54, 0.0  ;;  %v883_v56 = vpop.f32.mrb[6].mxu0 }
  0xf8   : > { %v408_v58 = vadd.f32 %v883_v56, %v798_v38  ;;  %v402_v59 = vpop.f32.mrb[7].mxu0 }
  0xf9   : > { %v403_v60 = vadd.f32 %v798_v38, %v402_v59  ;;  %922 = vmatprep.mubr.f32.mxu1 %v415_v55 }
  0xfa   : > { %923 = vmatmul.mubr.f32.gmra.mrb[2].mxu1 %v416_v57  ;;  %v418_v62 = vmax.f32 %v408_v58, 0.0 }
  0xfb   : > { %v417_v61 = vmax.f32 %v403_v60, 0.0 }
  0xfd   : > { %925 = vmatprep.mubr.f32.mxu1 %v417_v61 }
  0xfe   : > { %926 = vmatmul.mubr.f32.gmra.mrb[4].mxu1 %v418_v62 }
 0x1c5   : > { %v918_v0 = vpop.f32.mrb[8].mxu0 }
 0x1c6   : > { %v498_v1 = vadd.f32 %v918_v0, %v807_v63  ;;  %v492_v2 = vpop.f32.mrb[9].mxu0 }
 0x1c7   : > { %v493_v3 = vadd.f32 %v807_v63, %v492_v2 }
 0x1c8   : > { %1072 = vtanh.f32 %v498_v1 }
 0x1c9   : > { %1074 = vtanh.f32 %v493_v3  ;;  %v921_v4 = vpop.f32.mrb[0].mxu1 }
 0x1ca   : > { %v508_v5 = vadd.f32 %v921_v4, %v807_v63  ;;  %v502_v6 = vpop.f32.mrb[1].mxu1 }
 0x1cb   : > { %v503_v7 = vadd.f32 %v807_v63, %v502_v6 }
 0x1cc   : > { %1076 = vtanh.f32 %v508_v5 }
 0x1cd   : > { %1078 = vtanh.f32 %v503_v7  ;;  %v924_v8 = vpop.f32.mrb[2].mxu1 }
 0x1ce   : > { %v518_v9 = vadd.f32 %v924_v8, %v807_v63  ;;  %v512_v10 = vpop.f32.mrb[3].mxu1 }
 0x1cf   : > { %v513_v11 = vadd.f32 %v807_v63, %v512_v10 }
 0x1d0   : > { %1080 = vtanh.f32 %v518_v9 }
 0x1d1   : > { %1082 = vtanh.f32 %v513_v11  ;;  %v927_v12 = vpop.f32.mrb[4].mxu1 }
 0x1d2   : > { %v1073_v13 = vpop.eup %1072  ;;  %v528_v14 = vadd.f32 %v927_v12, %v807_v63  ;;  %v522_v15 = vpop.f32.mrb[5].mxu1 }
 0x1d3   : > { %v1075_v16 = vpop.eup %1074  ;;  %541 = vst.msk [vmem:[%s1328_s20 + $0x8] sm:$0xff] %vm539_vm1, %v1073_v13  ;;  %v523_v17 = vadd.f32 %v807_v63, %v522_v15 }
 0x1d4   : > { %540 = vst.msk [vmem:[%s1328_s20] sm:$0xff] %vm539_vm1, %v1075_v16  ;;  %1084 = vtanh.f32 %v528_v14 }
 0x1d5   : > { %1086 = vtanh.f32 %v523_v17 }
 0x1d6   : > { %v1077_v18 = vpop.eup %1076 }
 0x1d7   : > { %v1079_v19 = vpop.eup %1078  ;;  %543 = vst.msk [vmem:[%s1328_s20 + $0x18] sm:$0xff] %vm539_vm1, %v1077_v18 }
 0x1d8   : > { %542 = vst.msk [vmem:[%s1328_s20 + $0x10] sm:$0xff] %vm539_vm1, %v1079_v19 }
 0x1da   : > { %v1081_v20 = vpop.eup %1080  ;;  %554 = sbr.rel (!%p1231_p4) target bundleno = 530 (0x212), region = 44 }
 0x1db   : > { %v1083_v21 = vpop.eup %1082  ;;  %545 = vst.msk [vmem:[%s1328_s20 + $0x28] sm:$0xff] %vm539_vm1, %v1081_v20 }
 0x1dc   : > { %544 = vst.msk [vmem:[%s1328_s20 + $0x20] sm:$0xff] %vm539_vm1, %v1083_v21 }
 0x1de   : > { %v1085_v22 = vpop.eup %1084 }
 0x1df   : > { %v1087_v23 = vpop.eup %1086  ;;  %547 = vst.msk [vmem:[%s1328_s20 + $0x38] sm:$0xff] %vm539_vm1, %v1085_v22 }
 0x1e0   : > { %546 = vst.msk [vmem:[%s1328_s20 + $0x30] sm:$0xff] %vm539_vm1, %v1087_v23 }
 0x1e1   : > { %s1421_s18 = smov (!%p557_p8, %s556_s18), 8 }
 0x1e2   : > { %s810_s29 = sshll.u32 %s1421_s18, 7 }
 0x1e3   : > { %p813_p9 = scmp.eq.s32.totalorder %s810_s29, 0 }
 0x1e4   : > { %s1359_s30 = sshrl.u32 (!%p813_p9), %s1421_s18, 3 }
 0x1e5   : > { %565 = sbr.rel (%p813_p9) target bundleno = 530 (0x212), region = 48  ;;  %p814_p10 = scmp.le.s32.totalorder (!%p813_p9), %s1359_s30, 0 }
 0x1ec   : > { %747 = sbr.rel (%p814_p10) target bundleno = 509 (0x1fd), region = 124  ;;  %s1414_s21 = smov (!%p814_p10), %s1353_s28 }
 0x1ed   : > { %s1415_s26 = smov (!%p814_p10), %s1328_s20  ;;  %s1368_s8 = smov (!%p814_p10), 0  }
 0x1ee   : > { %s1370_s6 = smov (!%p814_p10), 0  }
 0x1f3 LB: >> { %v641_v24 = vld [vmem:[%s1150_s26] sm:$0xff]  ;;  %v643_v25 = vld [vmem:[%s1150_s26 + $0x8] sm:$0xff]  ;;  %v645_v26 = vld [vmem:[%s1150_s26 + $0x10] sm:$0xff]  ;;  %s657_s7 = sadd.s32 1, %s1154_s8  ;;  %s635_s6 = sadd.s32 1, %s1158_s6   ;;  %s1158_s6 = sphi %s1370_s6, %s635_s6   ;;  %s1154_s8 = sphi %s1368_s8, %s1416_s8   ;;  %s1150_s26 = sphi %s1415_s26, %s662_s26   ;;  %s1146_s21 = sphi %s1414_s21, %s663_s21  }
 0x1f4   : >> { %642 = vst [vmem:[%s1146_s21] sm:$0xff] %v641_v24  ;;  %644 = vst [vmem:[%s1146_s21 + $0x8] sm:$0xff] %v643_v25  ;;  %v647_v27 = vld [vmem:[%s1150_s26 + $0x18] sm:$0xff]  ;;  %v649_v28 = vld [vmem:[%s1150_s26 + $0x20] sm:$0xff]  ;;  %p658_p11 = scmp.ge.s32.totalorder %s657_s7, %s1359_s30  ;;  %p634_p12 = scmp.ge.s32.totalorder %s635_s6, %s1359_s30 }
 0x1f5   : >> { %646 = vst [vmem:[%s1146_s21 + $0x10] sm:$0xff] %v645_v26  ;;  %v651_v29 = vld [vmem:[%s1150_s26 + $0x28] sm:$0xff]  ;;  %648 = vst [vmem:[%s1146_s21 + $0x18] sm:$0xff] %v647_v27  ;;  %v653_v30 = vld [vmem:[%s1150_s26 + $0x30] sm:$0xff] }
 0x1f6   : >> { %650 = vst [vmem:[%s1146_s21 + $0x20] sm:$0xff] %v649_v28  ;;  %652 = vst [vmem:[%s1146_s21 + $0x28] sm:$0xff] %v651_v29  ;;  %v655_v31 = vld [vmem:[%s1150_s26 + $0x38] sm:$0xff]  ;;  %s1423_s7 = smov (%p658_p11, %s657_s7), 0  ;;  %637 = sbr.rel (!%p634_p12) target bundleno = 499 (0x1f3), region = 130 }
 0x1f7   : >> { %654 = vst [vmem:[%s1146_s21 + $0x30] sm:$0xff] %v653_v30  ;;  %656 = vst [vmem:[%s1146_s21 + $0x38] sm:$0xff] %v655_v31  ;;  %s815_s9 = sshll.u32 %s1423_s7, 6  ;;  %s1416_s8 = smov %s1423_s7 }
 0x1f8   : >> { %s662_s26 = scalar_lea.vmem %s1328_s20, %s815_s9 [#allocation2]   ;;  %s663_s21 = scalar_lea.vmem %s1353_s28, %s815_s9  }
 0x1fd PF: > { %s1389_s10 = sand.u32 7, %s1421_s18   ;;  %s826_s11 = sshll.u32 %s1359_s30, 6 }
 0x1fe   : > { %s668_s12 = scalar_lea.vmem %s1328_s20, %s826_s11 [#allocation2]   ;;  %s670_s13 = scalar_lea.vmem %s1353_s28, %s826_s11  }
 0x1ff   : > { %p820_p13 = scmp.le.s32.totalorder %s1389_s10, 0 }
 0x200   : > { %s1160_s14 = smov (!%p820_p13), %s670_s13   ;;  %s1164_s15 = smov (!%p820_p13), %s668_s12  }
 0x201   : > { %761 = sbr.rel (%p820_p13) target bundleno = 530 (0x212), region = 135  ;;  %s1168_s16 = smov (!%p820_p13), 0  }
 0x202   : > { %s1172_s17 = smov (!%p820_p13), 0  }
 0x208 LB: >> { %v680_v32 = vld [vmem:[%s1166_s15] sm:$0xff]  ;;  %s682_s18 = sadd.s32 1, %s1170_s16  ;;  %s674_s17 = sadd.s32 1, %s1174_s17   ;;  %s1174_s17 = sphi %s1172_s17, %s674_s17   ;;  %s1170_s16 = sphi %s1168_s16, %s1169_s16   ;;  %s1166_s15 = sphi %s1164_s15, %s687_s15   ;;  %s1162_s14 = sphi %s1160_s14, %s688_s14  }
 0x209   : >> { %681 = vst [vmem:[%s1162_s14] sm:$0xff] %v680_v32  ;;  %p683_p0 = scmp.ge.s32.totalorder %s682_s18, %s1389_s10  ;;  %p673_p1 = scmp.ge.s32.totalorder %s674_s17, %s1389_s10 }
 0x20b   : >> { %s1425_s18 = smov (%p683_p0, %s682_s18), 0  ;;  %676 = sbr.rel (!%p673_p1) target bundleno = 520 (0x208), region = 141 }
 0x20c   : >> { %s821_s20 = sshll.u32 %s1425_s18, 3  ;;  %s1169_s16 = smov %s1425_s18  }
 0x20d   : >> { %s687_s15 = scalar_lea.vmem %s668_s12, %s821_s20 [#allocation2]   ;;  %s688_s14 = scalar_lea.vmem %s670_s13, %s821_s20  }
 0x212 PF: > { %p12_p2 = scmp.ge.s32.totalorder %s1221_s22, 4   ;;  %s1417_s18 = smov %s1138_s19 }
 0x213   : > { %s1418_s19 = smov %s1229_s25  ;;  %s1419_s20 = smov %s1221_s22 }
 0x214   :  { %14 = sbr.rel (!%p12_p2) target bundleno = 2 (0x2), region = 152 }

</bundles_post_ra>
